<compile_context>
chip_gen: v5e
topology: v5e:2x2
jax: 0.10.0
libtpu: 0.0.40
codegen_flags: <defaults>
</compile_context>

<pallas_src>
import functools
import random
import numpy as np
import jax
import jax.numpy as jnp
from jax.experimental import pallas as pl
from jax.experimental.pallas import tpu as pltpu


def _round_up(x, m):
    return ((x + m - 1) // m) * m


def _pick_tile(dim, cap, align):
    return cap if dim >= cap else _round_up(dim, align)


# ----------------------------------------------------------------------------
# Pallas kernel: tiled bf16 matmul, f32 accumulation, post-matmul inv-deg scale
# ----------------------------------------------------------------------------
def mean_agg_kernel(mask_ref, embed_ref, inv_ref, out_ref, acc_ref):
    @pl.when(pl.program_id(2) == 0)
    def _init():
        acc_ref[...] = jnp.zeros_like(acc_ref)

    acc_ref[...] += jnp.dot(mask_ref[...], embed_ref[...],
                            preferred_element_type=jnp.float32)

    @pl.when(pl.program_id(2) == pl.num_programs(2) - 1)
    def _finalize():
        # Normalization applied on B*D outputs (not B*U mask) in f32.
        out_ref[...] = acc_ref[...] * inv_ref[...]


@functools.partial(
    jax.jit, static_argnames=("tm", "tn", "tk", "B_pad", "U_pad", "D_pad"))
def _mean_agg_impl(mask, embed, inv_deg, *, tm, tn, tk, B_pad, U_pad, D_pad):
    """Pad -> bf16 cast -> tiled Pallas matmul -> slice, all under one jit."""
    B, U = mask.shape
    _, D = embed.shape

    # Zero padding: extra mask columns / embed rows contribute nothing; extra
    # batch rows are sliced off afterwards. bf16 operands (mask is 0/1 -> exact).
    mask_p = jnp.zeros((B_pad, U_pad), jnp.bfloat16).at[:B, :U].set(
        mask.astype(jnp.bfloat16))
    embed_p = jnp.zeros((U_pad, D_pad), jnp.bfloat16).at[:U, :D].set(
        embed.astype(jnp.bfloat16))
    inv_p = jnp.ones((B_pad, 1), jnp.float32).at[:B, :].set(inv_deg)

    grid = (B_pad // tm, D_pad // tn, U_pad // tk)
    cost = pl.CostEstimate(
        flops=2 * B_pad * U_pad * D_pad,
        transcendentals=0,
        bytes_accessed=(mask_p.size * 2 + embed_p.size * 2
                        + inv_p.size * 4 + B_pad * D_pad * 4),
    )

    out = pl.pallas_call(
        mean_agg_kernel,
        out_shape=jax.ShapeDtypeStruct((B_pad, D_pad), jnp.float32),
        grid_spec=pltpu.PrefetchScalarGridSpec(
            num_scalar_prefetch=0,
            grid=grid,
            in_specs=[
                pl.BlockSpec((tm, tk), lambda i, j, k: (i, k)),   # mask tile
                pl.BlockSpec((tk, tn), lambda i, j, k: (k, j)),   # embed tile
                pl.BlockSpec((tm, 1), lambda i, j, k: (i, 0)),    # inv_deg col
            ],
            out_specs=pl.BlockSpec((tm, tn), lambda i, j, k: (i, j)),
            scratch_shapes=[pltpu.VMEM((tm, tn), jnp.float32)],
        ),
        compiler_params=pltpu.CompilerParams(
            dimension_semantics=("parallel", "parallel", "arbitrary"),
            vmem_limit_bytes=32 * 1024 * 1024,  # safe on v5e/v6e/v7x
        ),
        cost_estimate=cost,
    )(mask_p, embed_p, inv_p)

    return out[:B, :D]


def mean_aggregate(mask, embed_matrix, num_neigh=None):
    """mask: (B, U) 0/1 adjacency mask; embed_matrix: (U, D) f32 features;
    num_neigh: optional (B,) or (B,1) neighbor counts (else computed from mask)."""
    mask = jnp.asarray(mask, jnp.float32)
    embed_matrix = jnp.asarray(embed_matrix, jnp.float32)
    B, U = mask.shape
    U2, D = embed_matrix.shape
    assert U == U2

    if num_neigh is None:
        num_neigh = jnp.sum(mask, axis=1, keepdims=True)
    num_neigh = jnp.asarray(num_neigh, jnp.float32).reshape(B, 1)
    inv_deg = 1.0 / jnp.maximum(num_neigh, 1.0)  # guard zero-neighbor rows

    # Tile sizes: MXU / lane aligned; padded extents are exact multiples of tiles.
    tm = _pick_tile(B, 256, 8)
    tn = _pick_tile(D, 512, 128)
    tk = _pick_tile(U, 1024, 128)
    B_pad, D_pad, U_pad = _round_up(B, tm), _round_up(D, tn), _round_up(U, tk)

    return _mean_agg_impl(mask, embed_matrix, inv_deg,
                          tm=tm, tn=tn, tk=tk,
                          B_pad=B_pad, U_pad=U_pad, D_pad=D_pad)


# ----------------------------------------------------------------------------
# MeanAggregator: same forward semantics as the PyTorch module
# ----------------------------------------------------------------------------
class MeanAggregator:
    def __init__(self, features, gcn=False):
        # features: function mapping int32 node-id array -> float32 feature rows
        self.features = features
        self.gcn = gcn

    def forward(self, nodes, to_neighs, num_sample=10):
        _set = set
        if num_sample is not None:
            samp_neighs = [
                _set(random.sample(sorted(to_neigh), num_sample))
                if len(to_neigh) >= num_sample else to_neigh
                for to_neigh in to_neighs
            ]
        else:
            samp_neighs = to_neighs
        if self.gcn:
            samp_neighs = [s.union({int(nodes[i])}) for i, s in enumerate(samp_neighs)]

        unique_nodes_list = list(set.union(*samp_neighs))
        unique_nodes = {n: i for i, n in enumerate(unique_nodes_list)}

        # Build the (B, U) 0/1 mask on host (pure index bookkeeping).
        mask = np.zeros((len(samp_neighs), len(unique_nodes)), dtype=np.float32)
        column_indices = [unique_nodes[n] for s in samp_neighs for n in s]
        row_indices = [i for i in range(len(samp_neighs)) for _ in samp_neighs[i]]
        mask[row_indices, column_indices] = 1.0

        # Host already knows each row's neighbor count: pass it so the kernel
        # never needs an in-kernel row-sum reduction.
        deg = np.array([len(s) for s in samp_neighs], dtype=np.float32).reshape(-1, 1)

        # Feature lookup (embedding gather) — plain-JAX glue.
        # TODO(synk): fuse this gather into the kernel (PrefetchScalarGridSpec +
        # Element row-gather / manual DMA from an HBM feature table) to avoid
        # materializing embed_matrix at real feature-table sizes.
        embed_matrix = self.features(jnp.asarray(unique_nodes_list, dtype=jnp.int32))

        # Padded, bf16-operand, tiled matmul + post-matmul normalization on TPU.
        return mean_aggregate(jnp.asarray(mask), embed_matrix, num_neigh=deg)


# ----------------------------------------------------------------------------
# Demo
# ----------------------------------------------------------------------------
if __name__ == "__main__":
    NUM_NODES = 64    # total graph nodes
    FEAT_DIM = 32     # feature dimension
    BATCH = 8         # batch of query nodes
    NUM_SAMPLE = 10

    # Deterministic feature table (the `features` lookup function).
    key = jax.random.PRNGKey(0)
    feat_table = jax.random.normal(key, (NUM_NODES, FEAT_DIM), dtype=jnp.float32)
    features_fn = lambda ids: jnp.take(feat_table, ids, axis=0)

    # Deterministic synthetic graph: each node gets 5..15 random neighbors.
    random.seed(0)
    adj = []
    for n in range(NUM_NODES):
        deg = random.randint(5, 15)
        neighs = set(random.sample([m for m in range(NUM_NODES) if m != n], deg))
        adj.append(neighs)

    nodes = list(range(BATCH))
    to_neighs = [adj[n] for n in nodes]

    agg = MeanAggregator(features_fn, gcn=False)

    # Sampling uses random.sample; fix the seed so the reference sees identical
    # sampled neighbor sets.
    random.seed(123)
    out = agg.forward(nodes, to_neighs, num_sample=NUM_SAMPLE)
    out = jax.block_until_ready(out)

    # Pure-JAX/NumPy reference of the tensor hot path for verification.
    random.seed(123)
    samp = [set(random.sample(sorted(tn), NUM_SAMPLE)) if len(tn) >= NUM_SAMPLE else tn
            for tn in to_neighs]
    uniq = list(set.union(*samp))
    uidx = {n: i for i, n in enumerate(uniq)}
    mask_ref = np.zeros((len(samp), len(uniq)), dtype=np.float32)
    for i, s in enumerate(samp):
        for n in s:
            mask_ref[i, uidx[n]] = 1.0
    mask_ref = mask_ref / mask_ref.sum(1, keepdims=True)
    ref = mask_ref @ np.asarray(features_fn(jnp.asarray(uniq, dtype=jnp.int32)))

    assert out.shape == (BATCH, FEAT_DIM)
    # Tolerance loosened vs. the f32 reference: matmul operands are bf16
    # (f32 accumulation), which changes rounding slightly.
    np.testing.assert_allclose(np.asarray(out), ref, rtol=2e-2, atol=2e-2)

    print("KERNEL_OK")
</pallas_src>

<mosaic_0001>
module attributes {stable_mosaic.version = 11 : i64} {
  func.func @mean_agg_kernel(%arg0: i32, %arg1: i32, %arg2: i32, %arg3: memref<8x128xbf16, #tpu.memory_space<vmem>>, %arg4: memref<128x128xbf16, #tpu.memory_space<vmem>>, %arg5: memref<8x1xf32, #tpu.memory_space<vmem>>, %arg6: memref<8x128xf32, #tpu.memory_space<vmem>>, %arg7: memref<8x128xf32, #tpu.memory_space<vmem>>) attributes {dimension_semantics = [#tpu.dimension_semantics<parallel>, #tpu.dimension_semantics<parallel>, #tpu.dimension_semantics<arbitrary>], iteration_bounds = array<i64: 1, 1, 1>, scalar_prefetch = 0 : i64, scratch_operands = 1 : i64, tpu.core_type = #tpu.core_type<tc>, window_params = [{transform_indices = @transform_0, window_bounds = array<i64: 8, 128>}, {transform_indices = @transform_1, window_bounds = array<i64: 128, 128>}, {transform_indices = @transform_2, window_bounds = array<i64: 8, 1>}, {transform_indices = @transform_3, window_bounds = array<i64: 8, 128>}]} {
    %c0_i32 = arith.constant 0 : i32
    %0 = arith.cmpi eq, %arg2, %c0_i32 : i32
    %1 = arith.extui %0 : i1 to i32
    %c0_i32_0 = arith.constant 0 : i32
    %2 = arith.cmpi ne, %1, %c0_i32_0 : i32
    scf.if %2 {
      %cst_10 = arith.constant 0.000000e+00 : f32
      %12 = vector.broadcast %cst_10 : f32 to vector<8x128xf32>
      %c0_11 = arith.constant 0 : index
      %c0_12 = arith.constant 0 : index
      %13 = vector.load %arg7[%c0_11, %c0_12] : memref<8x128xf32, #tpu.memory_space<vmem>>, vector<8x128xf32>
      tpu.vector_store %arg7[%c0_11, %c0_12], %12 {strides = array<i32>} : memref<8x128xf32, #tpu.memory_space<vmem>>, vector<8x128xf32>,
    } else {
    }
    %c0 = arith.constant 0 : index
    %c0_1 = arith.constant 0 : index
    %3 = vector.load %arg7[%c0, %c0_1] : memref<8x128xf32, #tpu.memory_space<vmem>>, vector<8x128xf32>
    %c0_2 = arith.constant 0 : index
    %c0_3 = arith.constant 0 : index
    %4 = vector.load %arg3[%c0_2, %c0_3] : memref<8x128xbf16, #tpu.memory_space<vmem>>, vector<8x128xbf16>
    %c0_4 = arith.constant 0 : index
    %c0_5 = arith.constant 0 : index
    %5 = vector.load %arg4[%c0_4, %c0_5] : memref<128x128xbf16, #tpu.memory_space<vmem>>, vector<128x128xbf16>
    %cst = arith.constant dense<0.000000e+00> : vector<8x128xf32>
    %6 = tpu.matmul %4, %5, %cst {dimension_numbers = #tpu.dot_dimension_numbers<[1], [0], [0], [1], [0, 0, 1, 1], [], []>} : vector<8x128xbf16>, vector<128x128xbf16>, vector<8x128xf32> -> vector<8x128xf32>
    %7 = arith.addf %3, %6 : vector<8x128xf32>
    %c0_6 = arith.constant 0 : index
    %c0_7 = arith.constant 0 : index
    %8 = vector.load %arg7[%c0_6, %c0_7] : memref<8x128xf32, #tpu.memory_space<vmem>>, vector<8x128xf32>
    tpu.vector_store %arg7[%c0_6, %c0_7], %7 {strides = array<i32>} : memref<8x128xf32, #tpu.memory_space<vmem>>, vector<8x128xf32>,
    %c0_i32_8 = arith.constant 0 : i32
    %9 = arith.cmpi eq, %arg2, %c0_i32_8 : i32
    %10 = arith.extui %9 : i1 to i32
    %c0_i32_9 = arith.constant 0 : i32
    %11 = arith.cmpi ne, %10, %c0_i32_9 : i32
    scf.if %11 {
      %c0_10 = arith.constant 0 : index
      %c0_11 = arith.constant 0 : index
      %12 = vector.load %arg7[%c0_10, %c0_11] : memref<8x128xf32, #tpu.memory_space<vmem>>, vector<8x128xf32>
      %c0_12 = arith.constant 0 : index
      %c0_13 = arith.constant 0 : index
      %13 = vector.load %arg5[%c0_12, %c0_13] : memref<8x1xf32, #tpu.memory_space<vmem>>, vector<8x1xf32>
      %14 = vector.broadcast %13 : vector<8x1xf32> to vector<8x128xf32>
      %15 = arith.mulf %12, %14 : vector<8x128xf32>
      %c0_14 = arith.constant 0 : index
      %c0_15 = arith.constant 0 : index
      %16 = vector.load %arg6[%c0_14, %c0_15] : memref<8x128xf32, #tpu.memory_space<vmem>>, vector<8x128xf32>
      tpu.vector_store %arg6[%c0_14, %c0_15], %15 {strides = array<i32>} : memref<8x128xf32, #tpu.memory_space<vmem>>, vector<8x128xf32>,
    } else {
    }
    return
  }
  func.func @transform_0(%arg0: i32, %arg1: i32, %arg2: i32) -> (i32, i32) {
    %c0_i32 = arith.constant 0 : i32
    return %arg0, %arg2 : i32, i32
  }
  func.func @transform_1(%arg0: i32, %arg1: i32, %arg2: i32) -> (i32, i32) {
    %c0_i32 = arith.constant 0 : i32
    return %arg2, %arg1 : i32, i32
  }
  func.func @transform_2(%arg0: i32, %arg1: i32, %arg2: i32) -> (i32, i32) {
    %c0_i32 = arith.constant 0 : i32
    %c0_i32_0 = arith.constant 0 : i32
    return %arg0, %c0_i32 : i32, i32
  }
  func.func @transform_3(%arg0: i32, %arg1: i32, %arg2: i32) -> (i32, i32) {
    %c0_i32 = arith.constant 0 : i32
    return %arg0, %arg1 : i32, i32
  }
}

</mosaic_0001>

<bundles_post_ra>
// kernel: _mean_agg_impl.1
= control target key start
LH: loop header
LB: loop body
LE: loop exit
PB: predicated region body
PF: predicated region fallthrough
CT: control target
= control target key end

     0   :  { %v198_v2 = vmov 0   ;;  %s253_s0 = inlined_call_operand.vmem [shape: bf16[8,128], index: 0, kind: input, shape index: {}]   ;;  %s254_s1 = inlined_call_operand.vmem [shape: bf16[128,128], index: 1, kind: input, shape index: {}]   ;;  %s255_s2 = inlined_call_operand.vmem [shape: f32[8,1], index: 2, kind: input, shape index: {}]   ;;  %s256_s3 = inlined_call_operand.hbm [shape: f32[8,128], index: 3, kind: output, shape index: {}]  }
   0x1   :  { %v168_v0 = vld [vmem:[%s254_s1 + $0x38] sm:$0xff]  ;;  %v167_v1 = vld [vmem:[%s254_s1 + $0x30] sm:$0xff]  ;;  %171 = vset.pattern.permute.xlu0 %v198_v2  ;;  %v105_v3 = vld [vmem:[%s255_s2] sm:$0xff] }
   0x2   :  { %86 = vmatpush.bf16.msra.mxu0 %v168_v0 }
   0x3   :  { %8 = vsyncpa [#allocation4], 0  ;;  %108 = vperm.xlu0 %171, %v105_v3   ;;  %v166_v4 = vld [vmem:[%s254_s1 + $0x28] sm:$0xff]  ;;  %v165_v5 = vld [vmem:[%s254_s1 + $0x20] sm:$0xff]  ;;  %s199_s4 = smov [#allocation3]   ;;  %s120_s8 = sshll.u32 %s256_s3, 4  ;;  %s121_s8 = int_to_ptr.hbm [resolvable:$true] %s120_s8 }
   0x4   :  { %v164_v6 = vld [vmem:[%s254_s1 + $0x18] sm:$0xff]  ;;  %v163_v7 = vld [vmem:[%s254_s1 + $0x10] sm:$0xff]  ;;  %v162_v8 = vld [vmem:[%s254_s1 + $0x8] sm:$0xff]  ;;  %s118_s5 = sshll.u32 %s199_s4, 4  ;;  %s119_s5 = int_to_ptr.vmem [resolvable:$true] %s118_s5 }
   0x5   :  { %v161_v9 = vld [vmem:[%s254_s1] sm:$0xff] }
   0x6   :  { %87 = vmatpush.bf16.msra.mxu0 %v167_v1  ;;  %v21_v10 = vld [vmem:[%s253_s0] sm:$0xf] }
   0xa   :  { %88 = vmatpush.bf16.msra.mxu0 %v166_v4 }
   0xe   :  { %89 = vmatpush.bf16.msra.mxu0 %v165_v5 }
  0x12   :  { %90 = vmatpush.bf16.msra.mxu0 %v164_v6 }
  0x16   :  { %91 = vmatpush.bf16.msra.mxu0 %v163_v7 }
  0x1a   :  { %92 = vmatpush.bf16.msra.mxu0 %v162_v8 }
  0x1e   :  { %93 = vmatpush.bf16.msra.mxu0 %v161_v9 }
  0x21   :  { %94 = vmatmul.bf16.vlgmr.msra.gmra.mxu0 %v21_v10 }
  0x75   :  { %v109_v11 = vpop.permute.xlu0 %108 }
  0x9e   :  { %v95_v12 = vpop.f32.mrf.mxu0 }
  0x9f   :  { %v111_v13 = vmul.f32 %v109_v11, %v95_v12 }
  0xa1   :  { %112 = vst [vmem:[#allocation3] sm:$0xff] %v111_v13 }
  0xa2   :  { %123 = dma.vmem_to_hbm [thread:$0]  %s119_s5, 128, %s121_s8, [#allocation4]  }
  0xa6   :  { %v97_v14 = vpop.f32.mrf.mxu0 }
  0xa7   :  { %196 = dma.done.wait [#allocation4], 128  }
  0xa8   :  { %197 = vsyncadd [#allocation4], 4294967168 }
  0xa9   :  { %128 = vsyncpa [#allocation4], 1 }

</bundles_post_ra>
